<compile_context>
chip_gen: v7x
topology: tpu7x:2x2x1
jax: 0.10.0
libtpu: 0.0.40
codegen_flags: <defaults>
</compile_context>

<pallas_src>
import functools
import math

import jax
import jax.numpy as jnp
from jax.experimental import pallas as pl
from jax.experimental.pallas import tpu as pltpu

_LANE_WIDTH = 512  # lane-dense slab width (multiple of 128 -> unmasked full-width vst)


def _linreg_kernel(w_ref, b_ref, x_ref, o_ref):
    # w_ref / b_ref: shape-(1,) f32 scalars in SMEM.
    # x_ref / o_ref: lane-dense tiles in VMEM, kept in their NATIVE dtypes.
    x = x_ref[...].astype(jnp.float32)                       # compute in f32
    o_ref[...] = (w_ref[0] * x + b_ref[0]).astype(o_ref.dtype)


@functools.lru_cache(maxsize=1)
def _generation_tiling():
    """Return (per-array tile byte target, vmem_limit_bytes or None) per TPU gen."""
    kind = ""
    try:
        kind = jax.devices()[0].device_kind.lower()
    except Exception:
        pass
    vmem_cap = 0
    try:
        vmem_cap = int(pltpu.get_tpu_info().vmem_capacity_bytes)
    except Exception:
        pass

    if "v5" in kind:
        # v5e (~0.82 TB/s HBM): 2 MiB tiles are ~5 us/step vs ~0.35 us overhead;
        # 2-in + 2-out buffers (8 MiB) stay under the 16 MiB default scoped VMEM.
        return 2 << 20, None
    if vmem_cap and vmem_cap <= (64 << 20):
        # v7x: 64 MiB physical VMEM -> 8 MiB tiles, 32 MiB of double-buffers.
        return 8 << 20, 48 << 20
    if ("v6" in kind) or ("v7" in kind) or vmem_cap >= (96 << 20):
        # v6e: 128 MiB VMEM -> 8 MiB tiles push toward the HBM roofline.
        return 8 << 20, 64 << 20
    # Unknown generation: conservative 4 MiB tiles.
    return 4 << 20, 32 << 20


def _pick_block_rows(rows, width, itemsize, tile_bytes):
    """Largest row-tile (multiple of 8, or full extent) within the byte budget."""
    max_rows = max(tile_bytes // (width * itemsize), 1)
    if max_rows >= rows:
        return rows                        # single full-extent block (always legal)
    tm = (max_rows // 8) * 8               # (8,128) sublane alignment
    return tm if tm >= 8 else rows         # degenerate huge-width case


def _run_2d(x2, w32, b32, out_dtype, tile_bytes, vmem_limit):
    """Run the elementwise kernel over a lane-aligned 2-D slab."""
    rows, width = x2.shape
    in_item = jnp.dtype(x2.dtype).itemsize
    out_item = jnp.dtype(out_dtype).itemsize
    tm = _pick_block_rows(rows, width, max(in_item, out_item), tile_bytes)
    grid = (pl.cdiv(rows, tm),)

    cp_kwargs = dict(dimension_semantics=("parallel",))  # shard rows across 2 TCs on v7x
    if vmem_limit is not None:
        cp_kwargs["vmem_limit_bytes"] = int(vmem_limit)

    cost = pl.CostEstimate(
        flops=2 * rows * width,
        transcendentals=0,
        bytes_accessed=rows * width * (in_item + out_item),
    )

    return pl.pallas_call(
        _linreg_kernel,
        out_shape=jax.ShapeDtypeStruct((rows, width), out_dtype),
        grid=grid,
        in_specs=[
            pl.BlockSpec(memory_space=pltpu.MemorySpace.SMEM),   # weight (1,)
            pl.BlockSpec(memory_space=pltpu.MemorySpace.SMEM),   # bias (1,)
            pl.BlockSpec((tm, width), lambda i: (i, 0)),         # x tile
        ],
        out_specs=pl.BlockSpec((tm, width), lambda i: (i, 0)),
        compiler_params=pltpu.CompilerParams(**cp_kwargs),
        cost_estimate=cost,
    )(w32, b32, x2)


def linear_regression_forward(x: jax.Array, weight: jax.Array, bias: jax.Array) -> jax.Array:
    """y = weight * x + bias with scalar weight/bias, any input shape/rank."""
    assert weight.shape == (1,) and bias.shape == (1,)
    orig_shape = x.shape
    n = math.prod(orig_shape) if orig_shape else 1
    # Floating inputs keep their dtype (f32 accumulate, cast on store); integer
    # inputs promote to float32 (weight is float32), matching torch promotion.
    out_dtype = x.dtype if jnp.issubdtype(x.dtype, jnp.floating) else jnp.float32

    if n == 0:
        return jnp.zeros(orig_shape, out_dtype)

    w32 = weight.astype(jnp.float32)
    b32 = bias.astype(jnp.float32)
    tile_bytes, vmem_limit = _generation_tiling()

    if n % _LANE_WIDTH == 0:
        # Free contiguous reshape to a lane-dense [rows, 512] slab; no pad, no slice.
        x2 = x.reshape(n // _LANE_WIDTH, _LANE_WIDTH)
        y2 = _run_2d(x2, w32, b32, out_dtype, tile_bytes, vmem_limit)
        return y2.reshape(orig_shape)

    if x.ndim >= 2 and orig_shape[-1] % 128 == 0:
        # Already lane-aligned: collapse leading dims (free), keep native width.
        x2 = x.reshape(-1, orig_shape[-1])
        y2 = _run_2d(x2, w32, b32, out_dtype, tile_bytes, vmem_limit)
        return y2.reshape(orig_shape)

    # Ragged shapes only: pad + repack (one extra HBM pass in, one out — unavoidable).
    rows = -(-n // _LANE_WIDTH)
    flat = x.reshape(-1)
    pad = rows * _LANE_WIDTH - n
    if pad:
        flat = jnp.pad(flat, (0, pad))
    x2 = flat.reshape(rows, _LANE_WIDTH)
    y2 = _run_2d(x2, w32, b32, out_dtype, tile_bytes, vmem_limit)
    return y2.reshape(-1)[:n].reshape(orig_shape)


if __name__ == "__main__":
    key = jax.random.PRNGKey(0)
    kx, kw, kb, kx2, kx3 = jax.random.split(key, 5)

    # Deterministic parameter init (mirrors torch.randn(1) in __init__).
    weight = jax.random.normal(kw, (1,), dtype=jnp.float32)
    bias = jax.random.normal(kb, (1,), dtype=jnp.float32)

    # Lane-aligned f32 input (fast path: no pad, no slice).
    x = jax.random.normal(kx, (8, 128), dtype=jnp.float32)
    y = jax.block_until_ready(linear_regression_forward(x, weight, bias))
    y_ref = weight[0] * x + bias[0]
    assert y.shape == x.shape and y.dtype == x.dtype
    assert jnp.allclose(y, y_ref, rtol=1e-6, atol=1e-6)

    # Ragged / non-lane-aligned shape (pad + repack path).
    x_odd = jax.random.normal(kx2, (3, 5, 37), dtype=jnp.float32)
    y_odd = jax.block_until_ready(linear_regression_forward(x_odd, weight, bias))
    y_odd_ref = weight[0] * x_odd + bias[0]
    assert y_odd.shape == x_odd.shape and y_odd.dtype == x_odd.dtype
    assert jnp.allclose(y_odd, y_odd_ref, rtol=1e-6, atol=1e-6)

    # bf16 input: native-dtype HBM traffic with in-kernel f32 compute.
    x_bf = jax.random.normal(kx3, (16, 256), dtype=jnp.bfloat16)
    y_bf = jax.block_until_ready(linear_regression_forward(x_bf, weight, bias))
    y_bf_ref = (weight[0] * x_bf.astype(jnp.float32) + bias[0]).astype(jnp.bfloat16)
    assert y_bf.shape == x_bf.shape and y_bf.dtype == x_bf.dtype
    assert jnp.allclose(y_bf.astype(jnp.float32), y_bf_ref.astype(jnp.float32),
                        rtol=1e-2, atol=1e-2)

    print("KERNEL_OK")
</pallas_src>

<mosaic_0001>
module attributes {stable_mosaic.version = 11 : i64} {
  func.func @_linreg_kernel(%arg0: i32, %arg1: memref<1xf32, #tpu.memory_space<smem>>, %arg2: memref<1xf32, #tpu.memory_space<smem>>, %arg3: memref<2x512xf32, #tpu.memory_space<vmem>>, %arg4: memref<2x512xf32, #tpu.memory_space<vmem>>) attributes {dimension_semantics = [#tpu.dimension_semantics<parallel>], iteration_bounds = array<i64: 1>, scalar_prefetch = 0 : i64, scratch_operands = 0 : i64, tpu.core_type = #tpu.core_type<tc>, window_params = [{transform_indices = @transform_0, window_bounds = array<i64: 1>}, {transform_indices = @transform_1, window_bounds = array<i64: 1>}, {transform_indices = @transform_2, window_bounds = array<i64: 2, 512>}, {transform_indices = @transform_3, window_bounds = array<i64: 2, 512>}]} {
    %c0 = arith.constant 0 : index
    %c0_0 = arith.constant 0 : index
    %0 = vector.load %arg3[%c0, %c0_0] : memref<2x512xf32, #tpu.memory_space<vmem>>, vector<2x512xf32>
    %c0_1 = arith.constant 0 : index
    %1 = memref.load %arg1[%c0_1] : memref<1xf32, #tpu.memory_space<smem>>
    %2 = vector.broadcast %1 : f32 to vector<2x512xf32>
    %3 = arith.mulf %2, %0 : vector<2x512xf32>
    %c0_2 = arith.constant 0 : index
    %4 = memref.load %arg2[%c0_2] : memref<1xf32, #tpu.memory_space<smem>>
    %5 = vector.broadcast %4 : f32 to vector<2x512xf32>
    %6 = arith.addf %3, %5 : vector<2x512xf32>
    %c0_3 = arith.constant 0 : index
    %c0_4 = arith.constant 0 : index
    %7 = vector.load %arg4[%c0_3, %c0_4] : memref<2x512xf32, #tpu.memory_space<vmem>>, vector<2x512xf32>
    tpu.vector_store %arg4[%c0_3, %c0_4], %6 {strides = array<i32>} : memref<2x512xf32, #tpu.memory_space<vmem>>, vector<2x512xf32>,
    return
  }
  func.func @transform_0(%arg0: i32) -> i32 {
    %c0_i32 = arith.constant 0 : i32
    %c0_i32_0 = arith.constant 0 : i32
    return %c0_i32 : i32
  }
  func.func @transform_1(%arg0: i32) -> i32 {
    %c0_i32 = arith.constant 0 : i32
    %c0_i32_0 = arith.constant 0 : i32
    return %c0_i32 : i32
  }
  func.func @transform_2(%arg0: i32) -> (i32, i32) {
    %c0_i32 = arith.constant 0 : i32
    %c0_i32_0 = arith.constant 0 : i32
    return %arg0, %c0_i32 : i32, i32
  }
  func.func @transform_3(%arg0: i32) -> (i32, i32) {
    %c0_i32 = arith.constant 0 : i32
    %c0_i32_0 = arith.constant 0 : i32
    return %arg0, %c0_i32 : i32, i32
  }
}

</mosaic_0001>

<bundles_post_ra>
// kernel: tpu_custom_call.1
= control target key start
LH: loop header
LB: loop body
LE: loop exit
PB: predicated region body
PF: predicated region fallthrough
CT: control target
= control target key end

     0   :  { %10 = vsyncpa [#allocation5], 0  ;;  %s154_s0 = inlined_call_operand.<no memory space> [shape: f32[1], index: 0, kind: input, shape index: {}]   ;;  %s155_s1 = inlined_call_operand.<no memory space> [shape: f32[1], index: 1, kind: input, shape index: {}]   ;;  %s156_s2 = inlined_call_operand.hbm [shape: f32[2,512], index: 2, kind: input, shape index: {}]   ;;  %s157_s3 = inlined_call_operand.hbm [shape: f32[2,512], index: 3, kind: output, shape index: {}]  }
   0x1   :  { %11 = vsyncpa [#allocation6], 0  ;;  %s102_s12 = smov [#allocation4]   ;;  %s54_s16 = scalar_lea.hbm %s156_s2, 128 }
   0x2   :  { %s22_s13 = sshll.u32 %s102_s12, 4  ;;  %p55_p0 = scmp.ne.s32.totalorder %s156_s2, %s54_s16  ;;  %s23_s13 = int_to_ptr.vmem [resolvable:$true] %s22_s13 }
   0x3   :  { %p58_p1 = scmp.lt.u32.totalorder %s54_s16, %s156_s2 }
   0x5   :  { %p60_p2 = pnand %p58_p1, %p55_p0 }
   0x7   :  { %63 = shalt.err (!%p60_p2)
}
   0x8   :  { %s64_s21 = scalar_lea.vmem %s23_s13, 128  ;;  %p69_p4 = scmp.lt.s32.totalorder %s23_s13, %s23_s13 }
   0x9   :  { %p65_p3 = scmp.ne.s32.totalorder %s23_s13, %s64_s21  ;;  %p70_p5 = scmp.lt.s32.totalorder %s64_s21, %s64_s21 }
   0xb   :  { %p71_p6 = por %p70_p5, %p69_p4 }
   0xd   :  { %p72_p7 = pnand %p71_p6, %p65_p3 }
   0xf   :  { %75 = shalt.err (!%p72_p7)
}
  0x10   :  { %25 = dma.hbm_to_vmem [thread:$0]  %s156_s2, 128, %s23_s13, [#allocation5]  }
  0x11   :  { %98 = dma.done.wait [#allocation5], 128  }
  0x12   :  { %99 = vsyncadd [#allocation5], 4294967168  ;;  %v31_v0 = vstv %s154_s0  ;;  %v29_v1 = vld [vmem:[#allocation4] sm:$0xff]  ;;  %v34_v2 = vstv %s155_s1  ;;  %s103_s28 = smov [#allocation7]  }
  0x13   :  { %s43_s29 = sshll.u32 %s103_s28, 4  ;;  %v32_v3 = vmul.f32 %v31_v0, %v29_v1  ;;  %s44_s29 = int_to_ptr.vmem [resolvable:$true] %s43_s29 }
  0x14   :  { %s76_s30 = scalar_lea.vmem %s44_s29, 128  ;;  %p81_p9 = scmp.lt.s32.totalorder %s44_s29, %s44_s29 }
  0x15   :  { %v35_v4 = vadd.f32 %v34_v2, %v32_v3  ;;  %p77_p8 = scmp.ne.s32.totalorder %s44_s29, %s76_s30  ;;  %p82_p10 = scmp.lt.s32.totalorder %s76_s30, %s76_s30 }
  0x17   :  { %36 = vst [vmem:[#allocation7] sm:$0xff] %v35_v4  ;;  %p83_p11 = por %p82_p10, %p81_p9 }
  0x19   :  { %p84_p12 = pnand %p83_p11, %p77_p8 }
  0x1b   :  { %87 = shalt.err (!%p84_p12)
}
  0x1c   :  { %s88_s4 = scalar_lea.hbm %s157_s3, 128 }
  0x1d   :  { %p89_p13 = scmp.ne.s32.totalorder %s157_s3, %s88_s4  ;;  %p92_p0 = scmp.lt.u32.totalorder %s88_s4, %s157_s3 }
  0x1f   :  { %p94_p1 = pnand %p92_p0, %p89_p13 }
  0x21   :  { %97 = shalt.err (!%p94_p1)
}
  0x22   :  { %46 = dma.vmem_to_hbm [thread:$0]  %s44_s29, 128, %s157_s3, [#allocation6]  }
  0x23   :  { %100 = dma.done.wait [#allocation6], 128  }
  0x24   :  { %101 = vsyncadd [#allocation6], 4294967168 }
  0x25   :  { %50 = vsyncpa [#allocation5], 1 }
  0x26   :  { %51 = vsyncpa [#allocation6], 1 }

</bundles_post_ra>
